<compile_context>
chip_gen: v6e
topology: v6e:2x2x1
jax: 0.10.0
libtpu: 0.0.40
codegen_flags: <defaults>
</compile_context>

<pallas_src>
import jax
import jax.numpy as jnp
import numpy as np
from jax.experimental import pallas as pl
from jax.experimental.pallas import tpu as pltpu

HIDDEN_SIZE = 16
INPUT_SIZE = 2
OUT_SIZE = 2

# Packed-weight-slab layout (rows of a (SLAB_ROWS, LANE) f32 array).
LANE = 128
ROW_WHH = 0          # rows  0:16, cols 0:16  -> W_hh^T
ROW_WIH = 16         # rows 16:18, cols 0:16  -> W_ih^T (2 rows)
ROW_BIAS = 18        # row  18,    cols 0:16  -> b_ih + b_hh
ROW_WFC = 24         # rows 24:40, cols 0:2   -> W_fc^T (zero-padded lanes)
ROW_BFC = 40         # row  40,    cols 0:2   -> b_fc   (zero-padded lanes)
SLAB_ROWS = 48       # padded to a multiple of 8 sublanes


def rnn_fc_kernel(x_ref, h0_ref, slab_ref, out_ref, hN_ref):
    """Full RNN recurrence + final Linear in one invocation.

    x_ref:    (seq, batch, input)      h0_ref: (1, batch, hidden)
    slab_ref: (SLAB_ROWS, LANE) packed weights/biases (see layout above)
    out_ref:  (seq, LANE)  lane-dense fc output (cols >= OUT_SIZE are zero)
    hN_ref:   (1, batch, hidden) final hidden state
    """
    seq, batch, _ = x_ref.shape

    # ---- Unpack the single weight slab (loop-invariant, loaded once). ----
    w_hh_t = slab_ref[ROW_WHH:ROW_WHH + HIDDEN_SIZE, 0:HIDDEN_SIZE]   # (16,16)
    w0 = slab_ref[ROW_WIH:ROW_WIH + 1, 0:HIDDEN_SIZE]                 # (1,16)
    w1 = slab_ref[ROW_WIH + 1:ROW_WIH + 2, 0:HIDDEN_SIZE]             # (1,16)
    bias = slab_ref[ROW_BIAS:ROW_BIAS + 1, 0:HIDDEN_SIZE]             # (1,16)
    w_fc_t = slab_ref[ROW_WFC:ROW_WFC + HIDDEN_SIZE, :]               # (16,128)
    b_fc = slab_ref[ROW_BFC:ROW_BFC + 1, :]                           # (1,128)

    # ---- Hoisted input projection (off the serial h-dependence chain). ----
    # input_size == 2, so x @ W_ih^T is a rank-2 VPU broadcast update; the
    # result stays in vregs (no VMEM scratch round trip).
    x = x_ref[...]                                        # (seq, batch, 2)
    xw = (x[:, :, 0:1] * w0
          + x[:, :, 1:2] * w1
          + bias)                                         # (seq, batch, 16)

    # ---- Serial recurrence: only h @ W_hh^T stays on the critical path. ----
    h = h0_ref[0]                                         # (batch, hidden)
    last_rows = []
    for t in range(seq):                                  # static, fully unrolled
        pre = xw[t] + jnp.dot(h, w_hh_t, preferred_element_type=jnp.float32)
        h = jnp.tanh(pre)                                 # (batch, hidden)
        # Keep only the row the final Linear consumes (output[:, -1, :]).
        last_rows.append(h[batch - 1:batch, :])           # (1, hidden)
    fc_in = jnp.concatenate(last_rows, axis=0)            # (seq, hidden)

    hN_ref[0] = h
    # Lane-dense store; cols >= OUT_SIZE are zero by construction of the slab.
    out_ref[...] = (jnp.dot(fc_in, w_fc_t, preferred_element_type=jnp.float32)
                    + b_fc)


def _pack_weights(w_ih, w_hh, b_ih, b_hh, w_fc, b_fc):
    """Pack all weights/biases into one zero-padded (SLAB_ROWS, LANE) slab."""
    slab = jnp.zeros((SLAB_ROWS, LANE), jnp.float32)
    slab = slab.at[ROW_WHH:ROW_WHH + HIDDEN_SIZE, 0:HIDDEN_SIZE].set(w_hh.T)
    slab = slab.at[ROW_WIH:ROW_WIH + INPUT_SIZE, 0:HIDDEN_SIZE].set(w_ih.T)
    slab = slab.at[ROW_BIAS, 0:HIDDEN_SIZE].set(b_ih + b_hh)
    slab = slab.at[ROW_WFC:ROW_WFC + HIDDEN_SIZE, 0:OUT_SIZE].set(w_fc.T)
    slab = slab.at[ROW_BFC, 0:OUT_SIZE].set(b_fc)
    return slab


def rnn_neural_network_forward(x, hidden, params):
    """Pallas implementation of RNNNeuralNetwork.forward(x, hidden)."""
    w_ih, w_hh, b_ih, b_hh, w_fc, b_fc = params
    seq, batch, _ = x.shape
    slab = _pack_weights(w_ih, w_hh, b_ih, b_hh, w_fc, b_fc)

    vmem = lambda: pl.BlockSpec(memory_space=pltpu.MemorySpace.VMEM)

    out_pad, h_n = pl.pallas_call(
        rnn_fc_kernel,
        out_shape=(
            jax.ShapeDtypeStruct((seq, LANE), jnp.float32),
            jax.ShapeDtypeStruct((1, batch, HIDDEN_SIZE), jnp.float32),
        ),
        in_specs=[vmem(), vmem(), vmem()],
        out_specs=(vmem(), vmem()),
    )(x, hidden, slab)
    return out_pad[:, :OUT_SIZE], h_n


def reference_forward(x, hidden, params):
    """Pure-JAX reference mirroring the torch semantics exactly."""
    w_ih, w_hh, b_ih, b_hh, w_fc, b_fc = params
    seq = x.shape[0]
    h = hidden[0]
    hs = []
    for t in range(seq):
        h = jnp.tanh(x[t] @ w_ih.T + b_ih + h @ w_hh.T + b_hh)
        hs.append(h)
    output = jnp.stack(hs, axis=0)           # (seq, batch, hidden)
    out = output[:, -1, :] @ w_fc.T + b_fc   # (seq, 2)
    return out, h[None]


def init_params(key):
    """Deterministic init matching nn.RNN(2,16) + Linear(16,2) shapes."""
    ks = jax.random.split(key, 6)
    k = 1.0 / np.sqrt(HIDDEN_SIZE)
    w_ih = jax.random.uniform(ks[0], (HIDDEN_SIZE, INPUT_SIZE), jnp.float32, -k, k)
    w_hh = jax.random.uniform(ks[1], (HIDDEN_SIZE, HIDDEN_SIZE), jnp.float32, -k, k)
    b_ih = jax.random.uniform(ks[2], (HIDDEN_SIZE,), jnp.float32, -k, k)
    b_hh = jax.random.uniform(ks[3], (HIDDEN_SIZE,), jnp.float32, -k, k)
    w_fc = jax.random.uniform(ks[4], (OUT_SIZE, HIDDEN_SIZE), jnp.float32, -k, k)
    b_fc = jax.random.uniform(ks[5], (OUT_SIZE,), jnp.float32, -k, k)
    return (w_ih, w_hh, b_ih, b_hh, w_fc, b_fc)


if __name__ == "__main__":
    key = jax.random.PRNGKey(0)
    k_par, k_x, k_h = jax.random.split(key, 3)

    seq, batch = 8, 4
    params = init_params(k_par)
    x = jax.random.normal(k_x, (seq, batch, INPUT_SIZE), jnp.float32)
    hidden = jax.random.normal(k_h, (1, batch, HIDDEN_SIZE), jnp.float32)

    out, h_n = rnn_neural_network_forward(x, hidden, params)
    out = jax.block_until_ready(out)
    h_n = jax.block_until_ready(h_n)

    ref_out, ref_h = reference_forward(x, hidden, params)
    # Tolerance leaves headroom for whatever f32 MXU pass count Mosaic picks
    # per generation; real bugs show up as O(0.1)+ errors.
    np.testing.assert_allclose(np.asarray(out), np.asarray(ref_out), rtol=1e-4, atol=1e-4)
    np.testing.assert_allclose(np.asarray(h_n), np.asarray(ref_h), rtol=1e-4, atol=1e-4)

    print("KERNEL_OK")
</pallas_src>

<mosaic_0001>
module attributes {stable_mosaic.version = 11 : i64} {
  func.func @rnn_fc_kernel(%arg0: memref<8x4x2xf32, #tpu.memory_space<vmem>>, %arg1: memref<1x4x16xf32, #tpu.memory_space<vmem>>, %arg2: memref<48x128xf32, #tpu.memory_space<vmem>>, %arg3: memref<8x128xf32, #tpu.memory_space<vmem>>, %arg4: memref<1x4x16xf32, #tpu.memory_space<vmem>>) attributes {dimension_semantics = [], scalar_prefetch = 0 : i64, scratch_operands = 0 : i64, tpu.core_type = #tpu.core_type<tc>} {
    %c0 = arith.constant 0 : index
    %c0_0 = arith.constant 0 : index
    %0 = vector.load %arg2[%c0, %c0_0] : memref<48x128xf32, #tpu.memory_space<vmem>>, vector<16x16xf32>
    %c16 = arith.constant 16 : index
    %c0_1 = arith.constant 0 : index
    %1 = vector.load %arg2[%c16, %c0_1] : memref<48x128xf32, #tpu.memory_space<vmem>>, vector<1x16xf32>
    %c17 = arith.constant 17 : index
    %c0_2 = arith.constant 0 : index
    %2 = vector.load %arg2[%c17, %c0_2] : memref<48x128xf32, #tpu.memory_space<vmem>>, vector<1x16xf32>
    %c18 = arith.constant 18 : index
    %c0_3 = arith.constant 0 : index
    %3 = vector.load %arg2[%c18, %c0_3] : memref<48x128xf32, #tpu.memory_space<vmem>>, vector<1x16xf32>
    %c24 = arith.constant 24 : index
    %c0_4 = arith.constant 0 : index
    %4 = vector.load %arg2[%c24, %c0_4] : memref<48x128xf32, #tpu.memory_space<vmem>>, vector<16x128xf32>
    %c40 = arith.constant 40 : index
    %c0_5 = arith.constant 0 : index
    %5 = vector.load %arg2[%c40, %c0_5] : memref<48x128xf32, #tpu.memory_space<vmem>>, vector<1x128xf32>
    %c0_6 = arith.constant 0 : index
    %c0_7 = arith.constant 0 : index
    %c0_8 = arith.constant 0 : index
    %6 = vector.load %arg0[%c0_6, %c0_7, %c0_8] : memref<8x4x2xf32, #tpu.memory_space<vmem>>, vector<8x4x2xf32>
    %7 = vector.extract_strided_slice %6 {offsets = [0, 0, 0], sizes = [8, 4, 1], strides = [1, 1, 1]} : vector<8x4x2xf32> to vector<8x4x1xf32>
    %8 = vector.shape_cast %1 : vector<1x16xf32> to vector<1x1x16xf32>
    %9 = vector.broadcast %7 : vector<8x4x1xf32> to vector<8x4x16xf32>
    %10 = vector.broadcast %8 : vector<1x1x16xf32> to vector<8x4x16xf32>
    %11 = arith.mulf %9, %10 : vector<8x4x16xf32>
    %12 = vector.extract_strided_slice %6 {offsets = [0, 0, 1], sizes = [8, 4, 1], strides = [1, 1, 1]} : vector<8x4x2xf32> to vector<8x4x1xf32>
    %13 = vector.shape_cast %2 : vector<1x16xf32> to vector<1x1x16xf32>
    %14 = vector.broadcast %12 : vector<8x4x1xf32> to vector<8x4x16xf32>
    %15 = vector.broadcast %13 : vector<1x1x16xf32> to vector<8x4x16xf32>
    %16 = arith.mulf %14, %15 : vector<8x4x16xf32>
    %17 = arith.addf %11, %16 : vector<8x4x16xf32>
    %18 = vector.shape_cast %3 : vector<1x16xf32> to vector<1x1x16xf32>
    %19 = vector.broadcast %18 : vector<1x1x16xf32> to vector<8x4x16xf32>
    %20 = arith.addf %17, %19 : vector<8x4x16xf32>
    %c0_9 = arith.constant 0 : index
    %c0_10 = arith.constant 0 : index
    %c0_11 = arith.constant 0 : index
    %21 = vector.load %arg1[%c0_9, %c0_10, %c0_11] : memref<1x4x16xf32, #tpu.memory_space<vmem>>, vector<1x4x16xf32>
    %22 = vector.shape_cast %21 : vector<1x4x16xf32> to vector<4x16xf32>
    %23 = vector.extract_strided_slice %20 {offsets = [0, 0, 0], sizes = [1, 4, 16], strides = [1, 1, 1]} : vector<8x4x16xf32> to vector<1x4x16xf32>
    %24 = vector.shape_cast %23 : vector<1x4x16xf32> to vector<4x16xf32>
    %cst = arith.constant dense<0.000000e+00> : vector<4x16xf32>
    %25 = tpu.matmul %22, %0, %cst {dimension_numbers = #tpu.dot_dimension_numbers<[1], [0], [0], [1], [0, 0, 1, 1], [], []>} : vector<4x16xf32>, vector<16x16xf32>, vector<4x16xf32> -> vector<4x16xf32>
    %26 = arith.addf %24, %25 : vector<4x16xf32>
    %27 = math.tanh %26 : vector<4x16xf32>
    %28 = vector.extract_strided_slice %27 {offsets = [3, 0], sizes = [1, 16], strides = [1, 1]} : vector<4x16xf32> to vector<1x16xf32>
    %29 = vector.extract_strided_slice %20 {offsets = [1, 0, 0], sizes = [1, 4, 16], strides = [1, 1, 1]} : vector<8x4x16xf32> to vector<1x4x16xf32>
    %30 = vector.shape_cast %29 : vector<1x4x16xf32> to vector<4x16xf32>
    %cst_12 = arith.constant dense<0.000000e+00> : vector<4x16xf32>
    %31 = tpu.matmul %27, %0, %cst_12 {dimension_numbers = #tpu.dot_dimension_numbers<[1], [0], [0], [1], [0, 0, 1, 1], [], []>} : vector<4x16xf32>, vector<16x16xf32>, vector<4x16xf32> -> vector<4x16xf32>
    %32 = arith.addf %30, %31 : vector<4x16xf32>
    %33 = math.tanh %32 : vector<4x16xf32>
    %34 = vector.extract_strided_slice %33 {offsets = [3, 0], sizes = [1, 16], strides = [1, 1]} : vector<4x16xf32> to vector<1x16xf32>
    %35 = vector.extract_strided_slice %20 {offsets = [2, 0, 0], sizes = [1, 4, 16], strides = [1, 1, 1]} : vector<8x4x16xf32> to vector<1x4x16xf32>
    %36 = vector.shape_cast %35 : vector<1x4x16xf32> to vector<4x16xf32>
    %cst_13 = arith.constant dense<0.000000e+00> : vector<4x16xf32>
    %37 = tpu.matmul %33, %0, %cst_13 {dimension_numbers = #tpu.dot_dimension_numbers<[1], [0], [0], [1], [0, 0, 1, 1], [], []>} : vector<4x16xf32>, vector<16x16xf32>, vector<4x16xf32> -> vector<4x16xf32>
    %38 = arith.addf %36, %37 : vector<4x16xf32>
    %39 = math.tanh %38 : vector<4x16xf32>
    %40 = vector.extract_strided_slice %39 {offsets = [3, 0], sizes = [1, 16], strides = [1, 1]} : vector<4x16xf32> to vector<1x16xf32>
    %41 = vector.extract_strided_slice %20 {offsets = [3, 0, 0], sizes = [1, 4, 16], strides = [1, 1, 1]} : vector<8x4x16xf32> to vector<1x4x16xf32>
    %42 = vector.shape_cast %41 : vector<1x4x16xf32> to vector<4x16xf32>
    %cst_14 = arith.constant dense<0.000000e+00> : vector<4x16xf32>
    %43 = tpu.matmul %39, %0, %cst_14 {dimension_numbers = #tpu.dot_dimension_numbers<[1], [0], [0], [1], [0, 0, 1, 1], [], []>} : vector<4x16xf32>, vector<16x16xf32>, vector<4x16xf32> -> vector<4x16xf32>
    %44 = arith.addf %42, %43 : vector<4x16xf32>
    %45 = math.tanh %44 : vector<4x16xf32>
    %46 = vector.extract_strided_slice %45 {offsets = [3, 0], sizes = [1, 16], strides = [1, 1]} : vector<4x16xf32> to vector<1x16xf32>
    %47 = vector.extract_strided_slice %20 {offsets = [4, 0, 0], sizes = [1, 4, 16], strides = [1, 1, 1]} : vector<8x4x16xf32> to vector<1x4x16xf32>
    %48 = vector.shape_cast %47 : vector<1x4x16xf32> to vector<4x16xf32>
    %cst_15 = arith.constant dense<0.000000e+00> : vector<4x16xf32>
    %49 = tpu.matmul %45, %0, %cst_15 {dimension_numbers = #tpu.dot_dimension_numbers<[1], [0], [0], [1], [0, 0, 1, 1], [], []>} : vector<4x16xf32>, vector<16x16xf32>, vector<4x16xf32> -> vector<4x16xf32>
    %50 = arith.addf %48, %49 : vector<4x16xf32>
    %51 = math.tanh %50 : vector<4x16xf32>
    %52 = vector.extract_strided_slice %51 {offsets = [3, 0], sizes = [1, 16], strides = [1, 1]} : vector<4x16xf32> to vector<1x16xf32>
    %53 = vector.extract_strided_slice %20 {offsets = [5, 0, 0], sizes = [1, 4, 16], strides = [1, 1, 1]} : vector<8x4x16xf32> to vector<1x4x16xf32>
    %54 = vector.shape_cast %53 : vector<1x4x16xf32> to vector<4x16xf32>
    %cst_16 = arith.constant dense<0.000000e+00> : vector<4x16xf32>
    %55 = tpu.matmul %51, %0, %cst_16 {dimension_numbers = #tpu.dot_dimension_numbers<[1], [0], [0], [1], [0, 0, 1, 1], [], []>} : vector<4x16xf32>, vector<16x16xf32>, vector<4x16xf32> -> vector<4x16xf32>
    %56 = arith.addf %54, %55 : vector<4x16xf32>
    %57 = math.tanh %56 : vector<4x16xf32>
    %58 = vector.extract_strided_slice %57 {offsets = [3, 0], sizes = [1, 16], strides = [1, 1]} : vector<4x16xf32> to vector<1x16xf32>
    %59 = vector.extract_strided_slice %20 {offsets = [6, 0, 0], sizes = [1, 4, 16], strides = [1, 1, 1]} : vector<8x4x16xf32> to vector<1x4x16xf32>
    %60 = vector.shape_cast %59 : vector<1x4x16xf32> to vector<4x16xf32>
    %cst_17 = arith.constant dense<0.000000e+00> : vector<4x16xf32>
    %61 = tpu.matmul %57, %0, %cst_17 {dimension_numbers = #tpu.dot_dimension_numbers<[1], [0], [0], [1], [0, 0, 1, 1], [], []>} : vector<4x16xf32>, vector<16x16xf32>, vector<4x16xf32> -> vector<4x16xf32>
    %62 = arith.addf %60, %61 : vector<4x16xf32>
    %63 = math.tanh %62 : vector<4x16xf32>
    %64 = vector.extract_strided_slice %63 {offsets = [3, 0], sizes = [1, 16], strides = [1, 1]} : vector<4x16xf32> to vector<1x16xf32>
    %65 = vector.extract_strided_slice %20 {offsets = [7, 0, 0], sizes = [1, 4, 16], strides = [1, 1, 1]} : vector<8x4x16xf32> to vector<1x4x16xf32>
    %66 = vector.shape_cast %65 : vector<1x4x16xf32> to vector<4x16xf32>
    %cst_18 = arith.constant dense<0.000000e+00> : vector<4x16xf32>
    %67 = tpu.matmul %63, %0, %cst_18 {dimension_numbers = #tpu.dot_dimension_numbers<[1], [0], [0], [1], [0, 0, 1, 1], [], []>} : vector<4x16xf32>, vector<16x16xf32>, vector<4x16xf32> -> vector<4x16xf32>
    %68 = arith.addf %66, %67 : vector<4x16xf32>
    %69 = math.tanh %68 : vector<4x16xf32>
    %70 = vector.extract_strided_slice %69 {offsets = [3, 0], sizes = [1, 16], strides = [1, 1]} : vector<4x16xf32> to vector<1x16xf32>
    %71 = tpu.concatenate %28, %34, %40, %46, %52, %58, %64, %70 in 0 : vector<1x16xf32>, vector<1x16xf32>, vector<1x16xf32>, vector<1x16xf32>, vector<1x16xf32>, vector<1x16xf32>, vector<1x16xf32>, vector<1x16xf32> -> vector<8x16xf32>
    %c0_19 = arith.constant 0 : index
    %c0_20 = arith.constant 0 : index
    %c0_21 = arith.constant 0 : index
    %72 = vector.load %arg4[%c0_19, %c0_20, %c0_21] : memref<1x4x16xf32, #tpu.memory_space<vmem>>, vector<1x4x16xf32>
    %73 = vector.shape_cast %72 : vector<1x4x16xf32> to vector<4x16xf32>
    %74 = vector.shape_cast %69 : vector<4x16xf32> to vector<1x4x16xf32>
    tpu.vector_store %arg4[%c0_19, %c0_20, %c0_21], %74 {strides = array<i32>} : memref<1x4x16xf32, #tpu.memory_space<vmem>>, vector<1x4x16xf32>,
    %cst_22 = arith.constant dense<0.000000e+00> : vector<8x128xf32>
    %75 = tpu.matmul %71, %4, %cst_22 {dimension_numbers = #tpu.dot_dimension_numbers<[1], [0], [0], [1], [0, 0, 1, 1], [], []>} : vector<8x16xf32>, vector<16x128xf32>, vector<8x128xf32> -> vector<8x128xf32>
    %76 = vector.broadcast %5 : vector<1x128xf32> to vector<8x128xf32>
    %77 = arith.addf %75, %76 : vector<8x128xf32>
    %c0_23 = arith.constant 0 : index
    %c0_24 = arith.constant 0 : index
    %78 = vector.load %arg3[%c0_23, %c0_24] : memref<8x128xf32, #tpu.memory_space<vmem>>, vector<8x128xf32>
    tpu.vector_store %arg3[%c0_23, %c0_24], %77 {strides = array<i32>} : memref<8x128xf32, #tpu.memory_space<vmem>>, vector<8x128xf32>,
    return
  }
}

</mosaic_0001>

<bundles_post_ra>
// kernel: tpu_custom_call.1
= control target key start
LH: loop header
LB: loop body
LE: loop exit
PB: predicated region body
PF: predicated region fallthrough
CT: control target
= control target key end

     0   :  { %10 = vsyncpa [#allocation3], 0  ;;  %s1253_s0 = inlined_call_operand.vmem [shape: f32[8,4,2], index: 0, kind: input, shape index: {}]   ;;  %s1254_s1 = inlined_call_operand.vmem [shape: f32[1,4,16], index: 1, kind: input, shape index: {}]   ;;  %s1255_s2 = inlined_call_operand.hbm [shape: f32[48,128], index: 2, kind: input, shape index: {}]   ;;  %s1256_s3 = inlined_call_operand.hbm [shape: f32[8,128], index: 3, kind: output, shape index: {0}]   ;;  %s1257_s4 = inlined_call_operand.hbm [shape: f32[1,4,16], index: 4, kind: output, shape index: {1}]  }
   0x1   :  { %11 = vsyncpa [#allocation4], 0 }
   0x2   :  { %12 = vsyncpa [#allocation7], 0  ;;  %s1103_s15 = smov [#allocation2]  }
   0x3   :  { %s22_s16 = sshll.u32 %s1103_s15, 4  ;;  %s23_s16 = int_to_ptr.vmem [resolvable:$true] %s22_s16 }
   0x4   :  { %s1045_s17 = scalar_lea.vmem %s23_s16, 768  ;;  %p1050_p1 = scmp.lt.s32.totalorder %s23_s16, %s23_s16 }
   0x5   :  { %p1046_p0 = scmp.ne.s32.totalorder %s23_s16, %s1045_s17  ;;  %p1051_p2 = scmp.lt.s32.totalorder %s1045_s17, %s1045_s17 }
   0x7   :  { %p1052_p3 = por %p1051_p2, %p1050_p1 }
   0x9   :  { %p1053_p4 = pnand %p1052_p3, %p1046_p0 }
   0xb   :  { %1056 = shalt.err (!%p1053_p4)
}
   0xc   :  { %s1104_s18 = smov 128   ;;  %s1105_s19 = smov 8  }
   0xd   :  { %28 = dma.hbm_to_vmem [thread:$0]  %s1255_s2, 768, %s23_s16, [#allocation3], %s1104_s18, %s1104_s18, %s1105_s19  }
   0xe   :  { %1097 = dma.done.wait [#allocation3], 768  }
   0xf   :  { %1098 = vsyncadd [#allocation3], 4294966528  ;;  %v1106_v0 = vmov 0.0   ;;  %vm1107_vm0 = vmmov 0   ;;  %v1108_v1 = vmov 0   ;;  %v1146_v2 = vld [vmem:[#allocation2 + $0x8] sm:$0xff] }
  0x10   :  { %944 = vmatprep.subr.mxu0 %v1106_v0  ;;  %948 = vmatprep.mubr.msk.f32.mxu0 %vm1107_vm0, %v1106_v0  ;;  %v1148_v3 = vld [vmem:[#allocation2] sm:$0xff]  ;;  %vm165_vm1 = vcmask 130048   ;;  %v1109_v7 = vmov 1   ;;  %v42_v8 = vld [vmem:[%s1253_s0 + $0x8] sm:$0xf]  ;;  %vm781_vm2 = vcmask 1040384  }
  0x11   :  { %1018 = vset.pattern.permute.xlu1 %v1108_v1  ;;  %1016 = vset.pattern.permute.xlu0 %v1108_v1  ;;  %v164_v4 = vld [vmem:[%s1254_s1] sm:$0xf]  ;;  %v41_v5 = vld [vmem:[%s1253_s0 + $0x4] sm:$0xf]  ;;  %v43_v9 = vld [vmem:[%s1253_s0 + $0xc] sm:$0xf] }
  0x12   :  { %951 = vmatprep.subr.mxu1 %v1106_v0  ;;  %955 = vmatprep.mubr.msk.f32.mxu1 %vm1107_vm0, %v1106_v0  ;;  %v40_v6 = vld [vmem:[%s1253_s0] sm:$0xf]  ;;  %v44_v10 = vld [vmem:[%s1253_s0 + $0x10] sm:$0xf]  ;;  %v45_v11 = vld [vmem:[%s1253_s0 + $0x14] sm:$0xf] }
  0x13   :  { %945 = vmatpush3.msra.mxu0 %v1146_v2  ;;  %952 = vmatpush3.msra.mxu1 %v1146_v2  ;;  %v46_v12 = vld [vmem:[%s1253_s0 + $0x18] sm:$0xf]  ;;  %v47_v13 = vld [vmem:[%s1253_s0 + $0x1c] sm:$0xf]  ;;  %v904_v16 = vld [vmem:[#allocation2 + $0x10] ss:$0 sm:$0xff] }
  0x14   :  { %946 = vmatprep.subr.mxu0 %v1106_v0  ;;  %55 = vperm.xlu1 %1018, %v41_v5   ;;  %v905_v19 = vld [vmem:[#allocation2 + $0x11] ss:$0 sm:$0xff]  ;;  %v906_v23 = vld [vmem:[#allocation2 + $0x12] ss:$0 sm:$0xff]  ;;  %vm783_vm3 = vcmask 1041408   ;;  %vm785_vm4 = vcmask 1042432  }
  0x15   :  { %947 = vmatpush3.msra.mxu0 %v1148_v3  ;;  %50 = vperm.xlu0 %1016, %v40_v6   ;;  %vm787_vm5 = vcmask 1043456   ;;  %vm789_vm6 = vcmask 1044480   ;;  %vm791_vm7 = vcmask 1045504   ;;  %vm795_vm8 = vcmask 125952   ;;  %s1110_s0 = smov [#allocation6]  }
  0x16   :  { %949 = vmatmul.mubr.msk.f32.vlgmr.msra.gmra.mxu0 %vm165_vm1, %v164_v4  ;;  %953 = vmatprep.subr.mxu1 %v1106_v0  ;;  %vm793_vm9 = vcmask 1046528   ;;  %s891_s12 = sshll.u32 %s1110_s0, 4  ;;  %s892_s12 = int_to_ptr.vmem [resolvable:$true] %s891_s12 }
  0x17   :  { %954 = vmatpush3.msra.mxu1 %v1148_v3  ;;  %958 = vmatprep.subr.mxu0 %v1106_v0  ;;  %s1057_s13 = scalar_lea.vmem %s892_s12, 64  ;;  %p1062_p6 = scmp.lt.s32.totalorder %s892_s12, %s892_s12 }
  0x18   :  { %1019 = vset.pattern.permute.xlu1 %v1109_v7  ;;  %959 = vmatpush3.msra.mxu0 %v1146_v2  ;;  %p1058_p5 = scmp.ne.s32.totalorder %s892_s12, %s1057_s13  ;;  %p1063_p7 = scmp.lt.s32.totalorder %s1057_s13, %s1057_s13 }
  0x19   :  { %105 = vperm.xlu1 %1019, %v41_v5   ;;  %1017 = vset.pattern.permute.xlu0 %v1109_v7 }
  0x1a   :  { %101 = vperm.xlu0 %1017, %v40_v6   ;;  %960 = vmatprep.subr.mxu0 %v1106_v0  ;;  %p1064_p8 = por %p1063_p7, %p1062_p6 }
  0x1b   :  { %961 = vmatpush3.msra.mxu0 %v1148_v3  ;;  %962 = vmatprep.mubr.msk.f32.mxu0 %vm1107_vm0, %v1106_v0 }
  0x1c   :  { %965 = vmatprep.subr.mxu1 %v1106_v0  ;;  %972 = vmatprep.subr.mxu0 %v1106_v0  ;;  %p1065_p9 = pnand %p1064_p8, %p1058_p5 }
  0x1d   :  { %1020 = vset.pattern.permute.xlu1 %v1108_v1 }
  0x1e   :  { %60 = vperm.xlu1 %1020, %v42_v8   ;;  %109 = vperm.xlu0 %1017, %v42_v8  }
  0x22   :  { %65 = vperm.xlu1 %1020, %v43_v9   ;;  %113 = vperm.xlu0 %1017, %v43_v9  }
  0x26   :  { %70 = vperm.xlu1 %1020, %v44_v10   ;;  %117 = vperm.xlu0 %1017, %v44_v10  }
  0x2a   :  { %75 = vperm.xlu1 %1020, %v45_v11   ;;  %121 = vperm.xlu0 %1017, %v45_v11  }
  0x2e   :  { %80 = vperm.xlu1 %1020, %v46_v12   ;;  %125 = vperm.xlu0 %1017, %v46_v12  }
  0x32   :  { %85 = vperm.xlu1 %1020, %v47_v13   ;;  %129 = vperm.xlu0 %1017, %v47_v13  }
  0x8f   :  { %v56_v14 = vpop.permute.xlu1 %55 }
  0x90   :  { %v51_v15 = vpop.permute.xlu0 %50  ;;  %v93_v17 = vmul.f32 %v904_v16, %v56_v14 }
  0x91   :  { %v92_v61 = vmul.f32 %v904_v16, %v51_v15 }
  0x94   :  { %v106_v18 = vpop.permute.xlu1 %105 }
  0x95   :  { %v137_v20 = vmul.f32 %v905_v19, %v106_v18  ;;  %v102_v21 = vpop.permute.xlu0 %101 }
  0x96   :  { %v136_v62 = vmul.f32 %v905_v19, %v102_v21 }
  0x97   :  { %v145_v22 = vadd.f32 %v137_v20, %v93_v17 }
  0x98   :  { %v144_v63 = vadd.f32 %v136_v62, %v92_v61 }
  0x99   :  { %v61_v24 = vpop.permute.xlu1 %60  ;;  %v110_v25 = vpop.permute.xlu0 %109  ;;  %v157_v26 = vadd.f32 %v906_v23, %v145_v22 }
  0x9a   :  { %v94_v27 = vmul.f32 %v904_v16, %v61_v24  ;;  %v138_v28 = vmul.f32 %v905_v19, %v110_v25  ;;  %v156_v1 = vadd.f32 %v906_v23, %v144_v63 }
  0x9c   :  { %v146_v29 = vadd.f32 %v138_v28, %v94_v27 }
  0x9d   :  { %v66_v30 = vpop.permute.xlu1 %65  ;;  %v114_v31 = vpop.permute.xlu0 %113 }
  0x9e   :  { %v95_v32 = vmul.f32 %v904_v16, %v66_v30  ;;  %v139_v33 = vmul.f32 %v905_v19, %v114_v31  ;;  %v158_v34 = vadd.f32 %v906_v23, %v146_v29 }
  0xa0   :  { %v147_v35 = vadd.f32 %v139_v33, %v95_v32 }
  0xa1   :  { %v71_v36 = vpop.permute.xlu1 %70  ;;  %v118_v37 = vpop.permute.xlu0 %117 }
  0xa2   :  { %v96_v38 = vmul.f32 %v904_v16, %v71_v36  ;;  %v140_v39 = vmul.f32 %v905_v19, %v118_v37  ;;  %v1192_v40 = vadd.f32 %v906_v23, %v147_v35 }
  0xa4   :  { %v148_v41 = vadd.f32 %v140_v39, %v96_v38 }
  0xa5   :  { %v76_v42 = vpop.permute.xlu1 %75  ;;  %v122_v43 = vpop.permute.xlu0 %121 }
  0xa6   :  { %v97_v44 = vmul.f32 %v904_v16, %v76_v42  ;;  %v141_v45 = vmul.f32 %v905_v19, %v122_v43  ;;  %v1194_v46 = vadd.f32 %v906_v23, %v148_v41  ;;  %v38_v42 = vld [vmem:[#allocation2 + $0x20] sm:$0xff]  ;;  %v37_v43 = vld [vmem:[#allocation2 + $0x18] sm:$0xff] }
  0xa8   :  { %v149_v47 = vadd.f32 %v141_v45, %v97_v44 }
  0xa9   :  { %v81_v48 = vpop.permute.xlu1 %80  ;;  %v126_v49 = vpop.permute.xlu0 %125 }
  0xaa   :  { %v98_v50 = vmul.f32 %v904_v16, %v81_v48  ;;  %v142_v51 = vmul.f32 %v905_v19, %v126_v49  ;;  %v1196_v52 = vadd.f32 %v906_v23, %v149_v47 }
  0xac   :  { %v150_v53 = vadd.f32 %v142_v51, %v98_v50 }
  0xad   :  { %v86_v54 = vpop.permute.xlu1 %85  ;;  %v130_v55 = vpop.permute.xlu0 %129 }
  0xae   :  { %v99_v56 = vmul.f32 %v904_v16, %v86_v54  ;;  %v143_v57 = vmul.f32 %v905_v19, %v130_v55  ;;  %v1198_v58 = vadd.f32 %v906_v23, %v150_v53 }
  0xb0   :  { %v151_v59 = vadd.f32 %v143_v57, %v99_v56 }
  0xb2   :  { %v1200_v60 = vadd.f32 %v906_v23, %v151_v59 }
  0xd6   :  { %v235_v4 = vpop.f32.mrf.mxu0 }
  0xd7   :  { %v239_v5 = vadd.f32 %v235_v4, %v156_v1 }
  0xd8   :  { %v950_v6 = vpop.f32.mrf.mxu0 }
  0xd9   :  { %1021 = vtanh.f32 %v239_v5 }
  0xe6   :  { %v1022_v7 = vpop.eup %1021 }
  0xe7   :  { %956 = vmatmul.mubr.msk.f32.vlgmr.msra.gmra.mxu1 %vm165_vm1, %v1022_v7  ;;  %v766_v12 = vrot.slane %v1022_v7, 3 }
  0xe8   :  { %966 = vmatpush3.msra.mxu1 %v1146_v2  ;;  %969 = vmatprep.mubr.msk.f32.mxu1 %vm1107_vm0, %v1106_v0 }
  0xe9   :  { %967 = vmatprep.subr.mxu1 %v1106_v0 }
  0xea   :  { %968 = vmatpush3.msra.mxu1 %v1148_v3 }
  0xeb   :  { %979 = vmatprep.subr.mxu1 %v1106_v0 }
 0x1a7   :  { %v310_v8 = vpop.f32.mrf.mxu1 }
 0x1a8   :  { %v314_v9 = vadd.f32 %v310_v8, %v157_v26 }
 0x1a9   :  { %v957_v10 = vpop.f32.mrf.mxu1 }
 0x1aa   :  { %1023 = vtanh.f32 %v314_v9 }
 0x1b7   :  { %v1024_v11 = vpop.eup %1023 }
 0x1b8   :  { %v768_v13 = vrot.slane %v1024_v11, 2  ;;  %963 = vmatmul.mubr.msk.f32.vlgmr.msra.gmra.mxu0 %vm165_vm1, %v1024_v11 }
 0x1b9   :  { %973 = vmatpush3.msra.mxu0 %v1146_v2  ;;  %976 = vmatprep.mubr.msk.f32.mxu0 %vm1107_vm0, %v1106_v0 }
 0x1ba   :  { %974 = vmatprep.subr.mxu0 %v1106_v0  ;;  %v782_v14 = vsel %vm781_vm2, %v766_v12, %v768_v13 }
 0x1bb   :  { %975 = vmatpush3.msra.mxu0 %v1148_v3 }
 0x1bc   :  { %986 = vmatprep.subr.mxu0 %v1106_v0 }
 0x278   :  { %v385_v15 = vpop.f32.mrf.mxu0 }
 0x279   :  { %v389_v16 = vadd.f32 %v385_v15, %v158_v34 }
 0x27a   :  { %v964_v17 = vpop.f32.mrf.mxu0 }
 0x27b   :  { %1025 = vtanh.f32 %v389_v16 }
 0x288   :  { %v1026_v18 = vpop.eup %1025 }
 0x289   :  { %v770_v19 = vrot.slane %v1026_v18, 1  ;;  %970 = vmatmul.mubr.msk.f32.vlgmr.msra.gmra.mxu1 %vm165_vm1, %v1026_v18 }
 0x28a   :  { %980 = vmatpush3.msra.mxu1 %v1146_v2  ;;  %983 = vmatprep.mubr.msk.f32.mxu1 %vm1107_vm0, %v1106_v0 }
 0x28b   :  { %981 = vmatprep.subr.mxu1 %v1106_v0  ;;  %v784_v20 = vsel %vm783_vm3, %v782_v14, %v770_v19 }
 0x28c   :  { %982 = vmatpush3.msra.mxu1 %v1148_v3 }
 0x28d   :  { %993 = vmatprep.subr.mxu1 %v1106_v0 }
 0x349   :  { %v460_v21 = vpop.f32.mrf.mxu1 }
 0x34a   :  { %v464_v22 = vadd.f32 %v460_v21, %v1192_v40 }
 0x34b   :  { %v971_v23 = vpop.f32.mrf.mxu1 }
 0x34c   :  { %1027 = vtanh.f32 %v464_v22 }
 0x359   :  { %v1028_v24 = vpop.eup %1027 }
 0x35a   :  { %977 = vmatmul.mubr.msk.f32.vlgmr.msra.gmra.mxu0 %vm165_vm1, %v1028_v24  ;;  %v786_v25 = vsel %vm785_vm4, %v784_v20, %v1028_v24 }
 0x35b   :  { %987 = vmatpush3.msra.mxu0 %v1146_v2  ;;  %990 = vmatprep.mubr.msk.f32.mxu0 %vm1107_vm0, %v1106_v0 }
 0x35c   :  { %988 = vmatprep.subr.mxu0 %v1106_v0 }
 0x35d   :  { %989 = vmatpush3.msra.mxu0 %v1148_v3 }
 0x35e   :  { %1000 = vmatprep.subr.mxu0 %v1106_v0 }
 0x41a   :  { %v535_v26 = vpop.f32.mrf.mxu0 }
 0x41b   :  { %v539_v27 = vadd.f32 %v535_v26, %v1194_v46 }
 0x41c   :  { %v978_v28 = vpop.f32.mrf.mxu0 }
 0x41d   :  { %1029 = vtanh.f32 %v539_v27 }
 0x42a   :  { %v1030_v29 = vpop.eup %1029 }
 0x42b   :  { %v772_v30 = vrot.slane %v1030_v29, 7  ;;  %984 = vmatmul.mubr.msk.f32.vlgmr.msra.gmra.mxu1 %vm165_vm1, %v1030_v29 }
 0x42c   :  { %994 = vmatpush3.msra.mxu1 %v1146_v2  ;;  %997 = vmatprep.mubr.msk.f32.mxu1 %vm1107_vm0, %v1106_v0 }
 0x42d   :  { %995 = vmatprep.subr.mxu1 %v1106_v0  ;;  %v788_v31 = vsel %vm787_vm5, %v786_v25, %v772_v30 }
 0x42e   :  { %996 = vmatpush3.msra.mxu1 %v1148_v3 }
 0x4eb   :  { %v610_v32 = vpop.f32.mrf.mxu1 }
 0x4ec   :  { %v614_v33 = vadd.f32 %v610_v32, %v1196_v52 }
 0x4ed   :  { %v985_v34 = vpop.f32.mrf.mxu1 }
 0x4ee   :  { %1031 = vtanh.f32 %v614_v33 }
 0x4fb   :  { %v1032_v35 = vpop.eup %1031 }
 0x4fc   :  { %991 = vmatmul.mubr.msk.f32.vlgmr.msra.gmra.mxu0 %vm165_vm1, %v1032_v35  ;;  %v774_v36 = vrot.slane %v1032_v35, 6 }
 0x4fd   :  { %1004 = vmatprep.mubr.msk.f32.mxu0 %vm1107_vm0, %v1106_v0  ;;  %1001 = vmatpush3.msra.mxu0 %v38_v42 }
 0x4fe   :  { %v790_v2 = vsel %vm789_vm6, %v788_v31, %v774_v36  ;;  %1002 = vmatprep.subr.mxu0 %v1106_v0 }
 0x4ff   :  { %1003 = vmatpush3.msra.mxu0 %v37_v43 }
 0x5bc   :  { %v685_v37 = vpop.f32.mrf.mxu0 }
 0x5bd   :  { %v689_v38 = vadd.f32 %v685_v37, %v1198_v58 }
 0x5be   :  { %v992_v39 = vpop.f32.mrf.mxu0 }
 0x5bf   :  { %1033 = vtanh.f32 %v689_v38 }
 0x5cc   :  { %v1034_v3 = vpop.eup %1033 }
 0x5cd   :  { %998 = vmatmul.mubr.msk.f32.vlgmr.msra.gmra.mxu1 %vm165_vm1, %v1034_v3  ;;  %v776_v40 = vrot.slane %v1034_v3, 5 }
 0x5cf   :  { %v792_v41 = vsel %vm791_vm7, %v790_v2, %v776_v40 }
 0x68d   :  { %v760_v44 = vpop.f32.mrf.mxu1 }
 0x68e   :  { %v764_v45 = vadd.f32 %v760_v44, %v1200_v60 }
 0x68f   :  { %v999_v46 = vpop.f32.mrf.mxu1 }
 0x690   :  { %1035 = vtanh.f32 %v764_v45 }
 0x69d   :  { %v1036_v47 = vpop.eup %1035 }
 0x69e   :  { %v779_v48 = vrot.slane %v1036_v47, 4  ;;  %796 = vst.msk [vmem:[#allocation6] sm:$0xf] %vm795_vm8, %v1036_v47 }
 0x6a0   :  { %v794_v49 = vsel %vm793_vm9, %v792_v41, %v779_v48 }
 0x6a1   :  { %1005 = vmatmul.mubr.msk.f32.vlgmr.msra.gmra.mxu0 %vm165_vm1, %v794_v49 }
 0x6a2   :  { %1068 = shalt.err (!%p1065_p9)
}
 0x6a3   :  { %894 = dma.vmem_to_hbm [thread:$0]  %s892_s12, 64, %s1257_s4, [#allocation7]   ;;  %v915_v0 = vld [vmem:[#allocation2 + $0x28] ss:$0 sm:$0xff] }
 0x6a4   :  { %s1111_s16 = smov [#allocation5]  }
 0x6a5   :  { %s881_s17 = sshll.u32 %s1111_s16, 4  ;;  %s882_s17 = int_to_ptr.vmem [resolvable:$true] %s881_s17 }
 0x6a6   :  { %s1077_s18 = scalar_lea.vmem %s882_s17, 128  ;;  %p1082_p11 = scmp.lt.s32.totalorder %s882_s17, %s882_s17 }
 0x6a7   :  { %p1078_p10 = scmp.ne.s32.totalorder %s882_s17, %s1077_s18  ;;  %p1083_p12 = scmp.lt.s32.totalorder %s1077_s18, %s1077_s18 }
 0x6a9   :  { %p1084_p13 = por %p1083_p12, %p1082_p11 }
 0x6ab   :  { %p1085_p0 = pnand %p1084_p13, %p1078_p10 }
 0x761   :  { %v870_v50 = vpop.f32.mrf.mxu0 }
 0x762   :  { %v871_v51 = vadd.f32 %v915_v0, %v870_v50 }
 0x763   :  { %v1006_v52 = vpop.f32.mrf.mxu0 }
 0x764   :  { %874 = vst [vmem:[#allocation5] sm:$0xff] %v871_v51 }
 0x765   :  { %1088 = shalt.err (!%p1085_p0)
}
 0x766   :  { %884 = dma.vmem_to_hbm [thread:$0]  %s882_s17, 128, %s1256_s3, [#allocation4]  }
 0x767   :  { %1099 = dma.done.wait [#allocation4], 128  }
 0x768   :  { %1100 = vsyncadd [#allocation4], 4294967168 }
 0x769   :  { %1101 = dma.done.wait [#allocation7], 64  }
 0x76a   :  { %1102 = vsyncadd [#allocation7], 4294967232 }
 0x76b   :  { %901 = vsyncpa [#allocation3], 1 }
 0x76c   :  { %902 = vsyncpa [#allocation4], 1 }
 0x76d   :  { %903 = vsyncpa [#allocation7], 1 }

</bundles_post_ra>
